<compile_context>
chip_gen: v7x
topology: tpu7x:2x2x1
jax: 0.10.0
libtpu: 0.0.40
codegen_flags: <defaults>
</compile_context>

<pallas_src>
import functools

import jax
import jax.numpy as jnp
from jax import lax
from jax.experimental import pallas as pl
from jax.experimental.pallas import tpu as pltpu

_BN_EPS = 1e-5


def _round_up(x, m):
    return (x + m - 1) // m * m


def _conv_stats_kernel(x_ref, w_ref, gb_ref, y_ref, sb_ref, sum_ref, sq_ref,
                       *, k, stride, count):
    """Pass 1: conv for one batch element + global BN statistics.

    x_ref : (1, C_in_p, L_in_p)   zero-padded input, one batch element
    w_ref : (K, C_out_p, C_in_p)  conv weight, tap-major (VMEM resident)
    gb_ref: (C_out_p, 2)          [gamma | beta]             (VMEM resident)
    y_ref : (1, C_out_p, L_out_p) raw conv output (written every step)
    sb_ref: (C_out_p, 2)          [scale | bias] (written on the last step)
    sum_ref/sq_ref: (C_out_p, 1)  persistent per-channel accumulators
    """
    n = pl.program_id(0)

    @pl.when(n == 0)
    def _init():
        sum_ref[...] = jnp.zeros_like(sum_ref)
        sq_ref[...] = jnp.zeros_like(sq_ref)

    co_p = y_ref.shape[1]
    lo_p = y_ref.shape[2]

    # On-chip im2col: K static shifted slices of the resident input block,
    # accumulated as K matmuls (contraction over the true C_in only).
    acc = jnp.zeros((co_p, lo_p), jnp.float32)
    for kk in range(k):                       # static, unrolled taps
        if stride == 1:
            xs = x_ref[0, :, kk:kk + lo_p]                    # (C_in_p, L_out_p)
        else:
            xs = x_ref[0, :, pl.ds(kk, lo_p, stride=stride)]  # static start
        acc = acc + jnp.dot(w_ref[kk], xs, preferred_element_type=jnp.float32)

    y_ref[0] = acc
    # Zero-padded channels / positions contribute exactly 0 to both sums.
    sum_ref[...] += jnp.sum(acc, axis=1, keepdims=True)
    sq_ref[...] += jnp.sum(acc * acc, axis=1, keepdims=True)

    @pl.when(n == pl.num_programs(0) - 1)
    def _finalize():
        # TODO(synk): E[y^2]-E[y]^2 in f32 can lose precision for strongly
        # non-centered activations; switch to a shifted / Welford accumulation
        # if real workloads require it.
        inv = jnp.float32(1.0 / count)                 # true N*L_out count
        mean = sum_ref[...] * inv                      # (C_out_p, 1)
        var = sq_ref[...] * inv - mean * mean
        scale = gb_ref[:, 0:1] * lax.rsqrt(var + _BN_EPS)
        bias = gb_ref[:, 1:2] - mean * scale
        sb_ref[...] = jnp.concatenate([scale, bias], axis=1)


def _apply_kernel(y_ref, sb_ref, o_ref):
    """Pass 2: pure elementwise y*scale + bias + ReLU (no matmul, no x read)."""
    y = y_ref[0]                                       # (C_out_p, L_out_p)
    scale = sb_ref[:, 0:1]
    bias = sb_ref[:, 1:2]
    o_ref[0] = jnp.maximum(y * scale + bias, 0.0).astype(o_ref.dtype)


def conv1d_block(x, weight, gamma, beta, *, stride=1, padding=0):
    """ReLU(BatchNorm1d(Conv1d(x))) with batch statistics.

    x: (N, C_in, L) f32; weight: (C_out, C_in, K); returns (N, C_out, L_out).
    """
    n, c_in, l_in = x.shape
    c_out, _, k = weight.shape
    l_out = (l_in + 2 * padding - k) // stride + 1

    # Sublane-granule channel padding only; the contraction depth stays the
    # true C_in.  The lane (length) axis is rounded to 128 only when it is
    # already >= 128 (lane-dense stores for real workloads, no pointless 8x
    # inflation of tiny outputs).
    c_in_p = _round_up(c_in, 8)
    co_p = _round_up(c_out, 8)
    lo_p = _round_up(l_out, 128) if l_out >= 128 else l_out
    li_p = max(l_in + 2 * padding, (lo_p - 1) * stride + k)

    f32 = jnp.float32
    # jnp.pad fuses into the producers (no zeros+dynamic-update-slice pass).
    x_p = jnp.pad(x.astype(f32),
                  ((0, 0), (0, c_in_p - c_in),
                   (padding, li_p - l_in - padding)))
    w_p = jnp.pad(jnp.transpose(weight.astype(f32), (2, 0, 1)),
                  ((0, 0), (0, co_p - c_out), (0, c_in_p - c_in)))
    gb = jnp.stack([jnp.pad(gamma.astype(f32), (0, co_p - c_out)),
                    jnp.pad(beta.astype(f32), (0, co_p - c_out))], axis=1)

    x_spec = pl.BlockSpec((1, c_in_p, li_p), lambda i: (i, 0, 0))
    w_spec = pl.BlockSpec((k, co_p, c_in_p), lambda i: (0, 0, 0))    # resident
    vec_spec = pl.BlockSpec((co_p, 2), lambda i: (0, 0))             # resident
    y_spec = pl.BlockSpec((1, co_p, lo_p), lambda i: (i, 0, 0))

    # Generation-aware VMEM limit (v5e/v6e: 128 MiB physical, v7x: 64 MiB).
    try:
        vmem_cap = pltpu.get_tpu_info().vmem_capacity_bytes
    except Exception:  # conservative fallback if the query is unavailable
        vmem_cap = 128 << 20
    blk_bytes = 4 * (c_in_p * li_p + k * co_p * c_in_p + 2 * co_p
                     + co_p * lo_p + 2 * co_p)
    needed = 2 * blk_bytes + 8 * co_p + (1 << 20)   # double buffers + scratch + slack
    budget = min(int(0.45 * vmem_cap), 56 << 20)
    vmem_limit = int(min(max(needed, budget), 0.9 * vmem_cap))

    kernel = functools.partial(_conv_stats_kernel, k=k, stride=stride,
                               count=float(n * l_out))

    # Pass 1: conv + global BN statistics.  The grid axis is a reduction for
    # the stats and the scale/bias output block is revisited every step, so it
    # must stay "arbitrary".
    y_raw, sb = pl.pallas_call(
        kernel,
        out_shape=(jax.ShapeDtypeStruct((n, co_p, lo_p), f32),
                   jax.ShapeDtypeStruct((co_p, 2), f32)),
        grid=(n,),
        in_specs=[x_spec, w_spec, vec_spec],
        out_specs=(y_spec, vec_spec),
        scratch_shapes=[pltpu.VMEM((co_p, 1), f32),
                        pltpu.VMEM((co_p, 1), f32)],
        compiler_params=pltpu.CompilerParams(
            dimension_semantics=("arbitrary",),
            vmem_limit_bytes=vmem_limit),
    )(x_p, w_p, gb)

    # Pass 2: elementwise normalization + ReLU; batch elements independent
    # (megacore-shardable).  No conv recompute — only y and scale/bias.
    out_p = pl.pallas_call(
        _apply_kernel,
        out_shape=jax.ShapeDtypeStruct((n, co_p, lo_p), f32),
        grid=(n,),
        in_specs=[y_spec, vec_spec],
        out_specs=y_spec,
        compiler_params=pltpu.CompilerParams(
            dimension_semantics=("parallel",),
            vmem_limit_bytes=vmem_limit),
    )(y_raw, sb)

    # Strip channel / length padding; output is already in NCL layout.
    return out_p[:, :c_out, :l_out]


def _reference(x, weight, gamma, beta, *, stride, padding):
    y = lax.conv_general_dilated(
        x, weight,
        window_strides=(stride,),
        padding=[(padding, padding)],
        dimension_numbers=("NCH", "OIH", "NCH"),
    )
    mean = y.mean(axis=(0, 2), keepdims=True)
    var = ((y - mean) ** 2).mean(axis=(0, 2), keepdims=True)
    y_hat = (y - mean) / jnp.sqrt(var + _BN_EPS)
    out = y_hat * gamma.reshape(1, -1, 1) + beta.reshape(1, -1, 1)
    return jnp.maximum(out, 0.0)


if __name__ == "__main__":
    # Conv1d(in_channels=4, out_channels=8, kernel_size=3, stride=1, padding=1)
    # applied to (batch=2, channels=4, length=16)
    N, C_IN, L = 2, 4, 16
    C_OUT, K, STRIDE, PAD = 8, 3, 1, 1

    key = jax.random.PRNGKey(0)
    kx, kw = jax.random.split(key)
    x = jax.random.normal(kx, (N, C_IN, L), dtype=jnp.float32)
    weight = jax.random.normal(kw, (C_OUT, C_IN, K), dtype=jnp.float32) * 0.1
    # BatchNorm1d default init: weight (gamma) = 1, bias (beta) = 0
    gamma = jnp.ones((C_OUT,), dtype=jnp.float32)
    beta = jnp.zeros((C_OUT,), dtype=jnp.float32)

    out = conv1d_block(x, weight, gamma, beta, stride=STRIDE, padding=PAD)
    out = jax.block_until_ready(out)

    ref = _reference(x, weight, gamma, beta, stride=STRIDE, padding=PAD)
    assert out.shape == ref.shape == (N, C_OUT, (L + 2 * PAD - K) // STRIDE + 1)
    assert jnp.allclose(out, ref, atol=1e-4, rtol=1e-4), "mismatch vs reference"

    print("KERNEL_OK")
</pallas_src>

<mosaic_0001>
module attributes {stable_mosaic.version = 11 : i64} {
  func.func @_conv_stats_kernel(%arg0: i32, %arg1: memref<1x8x18xf32, #tpu.memory_space<vmem>>, %arg2: memref<3x8x8xf32, #tpu.memory_space<vmem>>, %arg3: memref<8x2xf32, #tpu.memory_space<vmem>>, %arg4: memref<1x8x16xf32, #tpu.memory_space<vmem>>, %arg5: memref<8x2xf32, #tpu.memory_space<vmem>>, %arg6: memref<8x1xf32, #tpu.memory_space<vmem>>, %arg7: memref<8x1xf32, #tpu.memory_space<vmem>>) attributes {dimension_semantics = [#tpu.dimension_semantics<arbitrary>], iteration_bounds = array<i64: 2>, scalar_prefetch = 0 : i64, scratch_operands = 2 : i64, tpu.core_type = #tpu.core_type<tc>, window_params = [{transform_indices = @transform_0, window_bounds = array<i64: 1, 8, 18>}, {pipeline_mode = #tpu.pipeline_mode<synchronous>, transform_indices = @transform_1, window_bounds = array<i64: 3, 8, 8>}, {pipeline_mode = #tpu.pipeline_mode<synchronous>, transform_indices = @transform_2, window_bounds = array<i64: 8, 2>}, {transform_indices = @transform_3, window_bounds = array<i64: 1, 8, 16>}, {pipeline_mode = #tpu.pipeline_mode<synchronous>, transform_indices = @transform_4, window_bounds = array<i64: 8, 2>}]} {
    %c0_i32 = arith.constant 0 : i32
    %0 = arith.cmpi eq, %arg0, %c0_i32 : i32
    %1 = arith.extui %0 : i1 to i32
    %c0_i32_0 = arith.constant 0 : i32
    %2 = arith.cmpi ne, %1, %c0_i32_0 : i32
    scf.if %2 {
      %cst_33 = arith.constant 0.000000e+00 : f32
      %39 = vector.broadcast %cst_33 : f32 to vector<8x1xf32>
      %c0_34 = arith.constant 0 : index
      %c0_35 = arith.constant 0 : index
      %40 = vector.load %arg6[%c0_34, %c0_35] : memref<8x1xf32, #tpu.memory_space<vmem>>, vector<8x1xf32>
      tpu.vector_store %arg6[%c0_34, %c0_35], %39 {strides = array<i32>} : memref<8x1xf32, #tpu.memory_space<vmem>>, vector<8x1xf32>,
      %cst_36 = arith.constant 0.000000e+00 : f32
      %41 = vector.broadcast %cst_36 : f32 to vector<8x1xf32>
      %c0_37 = arith.constant 0 : index
      %c0_38 = arith.constant 0 : index
      %42 = vector.load %arg7[%c0_37, %c0_38] : memref<8x1xf32, #tpu.memory_space<vmem>>, vector<8x1xf32>
      tpu.vector_store %arg7[%c0_37, %c0_38], %41 {strides = array<i32>} : memref<8x1xf32, #tpu.memory_space<vmem>>, vector<8x1xf32>,
    } else {
    }
    %cst = arith.constant 0.000000e+00 : f32
    %3 = vector.broadcast %cst : f32 to vector<8x16xf32>
    %c0 = arith.constant 0 : index
    %c0_1 = arith.constant 0 : index
    %c0_2 = arith.constant 0 : index
    %4 = vector.load %arg1[%c0, %c0_1, %c0_2] : memref<1x8x18xf32, #tpu.memory_space<vmem>>, vector<1x8x16xf32>
    %5 = vector.shape_cast %4 : vector<1x8x16xf32> to vector<8x16xf32>
    %c0_3 = arith.constant 0 : index
    %c0_4 = arith.constant 0 : index
    %c0_5 = arith.constant 0 : index
    %6 = vector.load %arg2[%c0_3, %c0_4, %c0_5] : memref<3x8x8xf32, #tpu.memory_space<vmem>>, vector<1x8x8xf32>
    %7 = vector.shape_cast %6 : vector<1x8x8xf32> to vector<8x8xf32>
    %cst_6 = arith.constant dense<0.000000e+00> : vector<8x16xf32>
    %8 = tpu.matmul %7, %5, %cst_6 {dimension_numbers = #tpu.dot_dimension_numbers<[1], [0], [0], [1], [0, 0, 1, 1], [], []>} : vector<8x8xf32>, vector<8x16xf32>, vector<8x16xf32> -> vector<8x16xf32>
    %9 = arith.addf %3, %8 : vector<8x16xf32>
    %c0_7 = arith.constant 0 : index
    %c0_8 = arith.constant 0 : index
    %c1 = arith.constant 1 : index
    %10 = vector.load %arg1[%c0_7, %c0_8, %c1] : memref<1x8x18xf32, #tpu.memory_space<vmem>>, vector<1x8x16xf32>
    %11 = vector.shape_cast %10 : vector<1x8x16xf32> to vector<8x16xf32>
    %c1_9 = arith.constant 1 : index
    %c0_10 = arith.constant 0 : index
    %c0_11 = arith.constant 0 : index
    %12 = vector.load %arg2[%c1_9, %c0_10, %c0_11] : memref<3x8x8xf32, #tpu.memory_space<vmem>>, vector<1x8x8xf32>
    %13 = vector.shape_cast %12 : vector<1x8x8xf32> to vector<8x8xf32>
    %cst_12 = arith.constant dense<0.000000e+00> : vector<8x16xf32>
    %14 = tpu.matmul %13, %11, %cst_12 {dimension_numbers = #tpu.dot_dimension_numbers<[1], [0], [0], [1], [0, 0, 1, 1], [], []>} : vector<8x8xf32>, vector<8x16xf32>, vector<8x16xf32> -> vector<8x16xf32>
    %15 = arith.addf %9, %14 : vector<8x16xf32>
    %c0_13 = arith.constant 0 : index
    %c0_14 = arith.constant 0 : index
    %c2 = arith.constant 2 : index
    %16 = vector.load %arg1[%c0_13, %c0_14, %c2] : memref<1x8x18xf32, #tpu.memory_space<vmem>>, vector<1x8x16xf32>
    %17 = vector.shape_cast %16 : vector<1x8x16xf32> to vector<8x16xf32>
    %c2_15 = arith.constant 2 : index
    %c0_16 = arith.constant 0 : index
    %c0_17 = arith.constant 0 : index
    %18 = vector.load %arg2[%c2_15, %c0_16, %c0_17] : memref<3x8x8xf32, #tpu.memory_space<vmem>>, vector<1x8x8xf32>
    %19 = vector.shape_cast %18 : vector<1x8x8xf32> to vector<8x8xf32>
    %cst_18 = arith.constant dense<0.000000e+00> : vector<8x16xf32>
    %20 = tpu.matmul %19, %17, %cst_18 {dimension_numbers = #tpu.dot_dimension_numbers<[1], [0], [0], [1], [0, 0, 1, 1], [], []>} : vector<8x8xf32>, vector<8x16xf32>, vector<8x16xf32> -> vector<8x16xf32>
    %21 = arith.addf %15, %20 : vector<8x16xf32>
    %c0_19 = arith.constant 0 : index
    %c0_20 = arith.constant 0 : index
    %c0_21 = arith.constant 0 : index
    %22 = vector.load %arg4[%c0_19, %c0_20, %c0_21] : memref<1x8x16xf32, #tpu.memory_space<vmem>>, vector<1x8x16xf32>
    %23 = vector.shape_cast %22 : vector<1x8x16xf32> to vector<8x16xf32>
    %24 = vector.shape_cast %21 : vector<8x16xf32> to vector<1x8x16xf32>
    tpu.vector_store %arg4[%c0_19, %c0_20, %c0_21], %24 {strides = array<i32>} : memref<1x8x16xf32, #tpu.memory_space<vmem>>, vector<1x8x16xf32>,
    %c0_22 = arith.constant 0 : index
    %c0_23 = arith.constant 0 : index
    %25 = vector.load %arg6[%c0_22, %c0_23] : memref<8x1xf32, #tpu.memory_space<vmem>>, vector<8x1xf32>
    %cst_24 = arith.constant dense<0.000000e+00> : vector<8xf32>
    %26 = vector.multi_reduction <add>, %21, %cst_24 [1] : vector<8x16xf32> to vector<8xf32>
    %27 = vector.shape_cast %26 : vector<8xf32> to vector<8x1xf32>
    %28 = arith.addf %25, %27 : vector<8x1xf32>
    %c0_25 = arith.constant 0 : index
    %c0_26 = arith.constant 0 : index
    %29 = vector.load %arg6[%c0_25, %c0_26] : memref<8x1xf32, #tpu.memory_space<vmem>>, vector<8x1xf32>
    tpu.vector_store %arg6[%c0_25, %c0_26], %28 {strides = array<i32>} : memref<8x1xf32, #tpu.memory_space<vmem>>, vector<8x1xf32>,
    %c0_27 = arith.constant 0 : index
    %c0_28 = arith.constant 0 : index
    %30 = vector.load %arg7[%c0_27, %c0_28] : memref<8x1xf32, #tpu.memory_space<vmem>>, vector<8x1xf32>
    %31 = arith.mulf %21, %21 : vector<8x16xf32>
    %cst_29 = arith.constant dense<0.000000e+00> : vector<8xf32>
    %32 = vector.multi_reduction <add>, %31, %cst_29 [1] : vector<8x16xf32> to vector<8xf32>
    %33 = vector.shape_cast %32 : vector<8xf32> to vector<8x1xf32>
    %34 = arith.addf %30, %33 : vector<8x1xf32>
    %c0_30 = arith.constant 0 : index
    %c0_31 = arith.constant 0 : index
    %35 = vector.load %arg7[%c0_30, %c0_31] : memref<8x1xf32, #tpu.memory_space<vmem>>, vector<8x1xf32>
    tpu.vector_store %arg7[%c0_30, %c0_31], %34 {strides = array<i32>} : memref<8x1xf32, #tpu.memory_space<vmem>>, vector<8x1xf32>,
    %c1_i32 = arith.constant 1 : i32
    %36 = arith.cmpi eq, %arg0, %c1_i32 : i32
    %37 = arith.extui %36 : i1 to i32
    %c0_i32_32 = arith.constant 0 : i32
    %38 = arith.cmpi ne, %37, %c0_i32_32 : i32
    scf.if %38 {
      %c0_33 = arith.constant 0 : index
      %c0_34 = arith.constant 0 : index
      %39 = vector.load %arg6[%c0_33, %c0_34] : memref<8x1xf32, #tpu.memory_space<vmem>>, vector<8x1xf32>
      %cst_35 = arith.constant 3.125000e-02 : f32
      %40 = vector.broadcast %cst_35 : f32 to vector<8x1xf32>
      %41 = arith.mulf %39, %40 : vector<8x1xf32>
      %c0_36 = arith.constant 0 : index
      %c0_37 = arith.constant 0 : index
      %42 = vector.load %arg7[%c0_36, %c0_37] : memref<8x1xf32, #tpu.memory_space<vmem>>, vector<8x1xf32>
      %cst_38 = arith.constant 3.125000e-02 : f32
      %43 = vector.broadcast %cst_38 : f32 to vector<8x1xf32>
      %44 = arith.mulf %42, %43 : vector<8x1xf32>
      %45 = arith.mulf %41, %41 : vector<8x1xf32>
      %46 = arith.subf %44, %45 : vector<8x1xf32>
      %c0_39 = arith.constant 0 : index
      %c0_40 = arith.constant 0 : index
      %47 = vector.load %arg3[%c0_39, %c0_40] : memref<8x2xf32, #tpu.memory_space<vmem>>, vector<8x1xf32>
      %cst_41 = arith.constant 9.99999974E-6 : f32
      %48 = vector.broadcast %cst_41 : f32 to vector<8x1xf32>
      %49 = arith.addf %46, %48 : vector<8x1xf32>
      %50 = math.rsqrt %49 : vector<8x1xf32>
      %51 = arith.mulf %47, %50 : vector<8x1xf32>
      %c0_42 = arith.constant 0 : index
      %c1_43 = arith.constant 1 : index
      %52 = vector.load %arg3[%c0_42, %c1_43] : memref<8x2xf32, #tpu.memory_space<vmem>>, vector<8x1xf32>
      %53 = arith.mulf %41, %51 : vector<8x1xf32>
      %54 = arith.subf %52, %53 : vector<8x1xf32>
      %55 = tpu.concatenate %51, %54 in 1 : vector<8x1xf32>, vector<8x1xf32> -> vector<8x2xf32>
      %c0_44 = arith.constant 0 : index
      %c0_45 = arith.constant 0 : index
      %56 = vector.load %arg5[%c0_44, %c0_45] : memref<8x2xf32, #tpu.memory_space<vmem>>, vector<8x2xf32>
      tpu.vector_store %arg5[%c0_44, %c0_45], %55 {strides = array<i32>} : memref<8x2xf32, #tpu.memory_space<vmem>>, vector<8x2xf32>,
    } else {
    }
    return
  }
  func.func @transform_0(%arg0: i32) -> (i32, i32, i32) {
    %c0_i32 = arith.constant 0 : i32
    %c0_i32_0 = arith.constant 0 : i32
    %c0_i32_1 = arith.constant 0 : i32
    return %arg0, %c0_i32, %c0_i32_0 : i32, i32, i32
  }
  func.func @transform_1(%arg0: i32) -> (i32, i32, i32) {
    %c0_i32 = arith.constant 0 : i32
    %c0_i32_0 = arith.constant 0 : i32
    %c0_i32_1 = arith.constant 0 : i32
    %c0_i32_2 = arith.constant 0 : i32
    return %c0_i32, %c0_i32_0, %c0_i32_1 : i32, i32, i32
  }
  func.func @transform_2(%arg0: i32) -> (i32, i32) {
    %c0_i32 = arith.constant 0 : i32
    %c0_i32_0 = arith.constant 0 : i32
    %c0_i32_1 = arith.constant 0 : i32
    return %c0_i32, %c0_i32_0 : i32, i32
  }
  func.func @transform_3(%arg0: i32) -> (i32, i32, i32) {
    %c0_i32 = arith.constant 0 : i32
    %c0_i32_0 = arith.constant 0 : i32
    %c0_i32_1 = arith.constant 0 : i32
    return %arg0, %c0_i32, %c0_i32_0 : i32, i32, i32
  }
  func.func @transform_4(%arg0: i32) -> (i32, i32) {
    %c0_i32 = arith.constant 0 : i32
    %c0_i32_0 = arith.constant 0 : i32
    %c0_i32_1 = arith.constant 0 : i32
    return %c0_i32, %c0_i32_0 : i32, i32
  }
}

</mosaic_0001>

<bundles_post_ra>
// kernel: tpu_custom_call.1
= control target key start
LH: loop header
LB: loop body
LE: loop exit
PB: predicated region body
PF: predicated region fallthrough
CT: control target
= control target key end

     0   :  { %10 = vsyncpa [#allocation5], 0  ;;  %s1092_s0 = inlined_call_operand.hbm [shape: f32[2,8,18], index: 0, kind: input, shape index: {}]   ;;  %s1093_s1 = inlined_call_operand.hbm [shape: f32[3,8,8], index: 1, kind: input, shape index: {}]   ;;  %s1094_s2 = inlined_call_operand.vmem [shape: f32[8,2], index: 2, kind: input, shape index: {}]   ;;  %s1095_s3 = inlined_call_operand.hbm [shape: f32[2,8,16], index: 3, kind: output, shape index: {0}]   ;;  %s1096_s4 = inlined_call_operand.vmem [shape: f32[8,2], index: 4, kind: output, shape index: {1}]  }
   0x1   :  { %12 = vsyncpa [#allocation5 + $0x1], 0 }
   0x2   :  { %13 = vsyncpa [#allocation8], 0 }
   0x3   :  { %14 = vsyncpa [#allocation6], 0 }
   0x4   :  { %16 = vsyncpa [#allocation6 + $0x1], 0  ;;  %s882_s15 = smov 0   ;;  %s884_s16 = smov 0  }
   0x5   :  { %s886_s17 = smov 0   ;;  %s888_s18 = smov 0  }
   0x6 LB: > { %s903_s19 = sadd.s32 4294967295, %s844_s18   ;;  %s606_s20 = sadd.s32 4294967294, %s844_s18   ;;  %s844_s18 = sphi %s888_s18, %s1117_s18   ;;  %s840_s17 = sphi %s886_s17, %s1116_s17   ;;  %s836_s16 = sphi %s884_s16, %s1115_s16   ;;  %s832_s15 = sphi %s882_s15, %s1114_s15  }
   0x7   : > { %p42_p0 = scmp.ne.s32.totalorder %s836_s16, %s832_s15  ;;  %p1097_p1 = scmp.eq.s32.totalorder %s903_s19, 0 }
   0x8   : > { %p114_p3 = scmp.eq.s32.totalorder %s606_s20, 1  ;;  %p607_p5 = scmp.ge.s32.totalorder %s844_s18, 1 }
   0x9   : > { %p912_p4 = por %p1097_p1, %p42_p0  ;;  %p142_p7 = scmp.lt.s32.totalorder %s844_s18, 3 }
   0xa   : > { %p917_p6 = por %p114_p3, %p42_p0  ;;  %s846_s24 = smov [#allocation7]  }
   0xb   : > { %s1100_s21 = scalar_select %p912_p4, 1, 0 }
   0xc   : > { %s1101_s22 = scalar_select %p917_p6, 1, 0 }
   0xd   : > { %p923_p9 = pnand %p607_p5, %p142_p7  ;;  %s154_s25 = sshll.u32 %s846_s24, 4  ;;  %s927_s25 = int_to_ptr.vmem [resolvable:$true] %s154_s25 }
   0xe   : > { %s939_s27 = sadd.s32 1, %s844_s18   ;;  %s29_s28 = sadd.s32 1, %s840_s17 }
   0xf   : > { %s1102_s23 = scalar_select %p923_p9, 1, 0 }
  0x10   : > { %p657_p10 = pneg %p923_p9  ;;  %s26_s29 = ssub.s32 %s844_s18, %s939_s27 }
  0x11   : > { %s716_s6 = scalar_lea.hbm %s1093_s1, 384 }
  0x12   : > { %p934_p12 = pnand %p657_p10, %p1097_p1  ;;  %p717_p13 = scmp.ne.s32.totalorder %s1093_s1, %s716_s6 }
  0x13   : > { %p723_p7 = scmp.lt.u32.totalorder %s716_s6, %s1093_s1 }
  0x14   : > { %p718_p0 = pneg %p934_p12 }
  0x16   : > { %p719_p3 = pnand %p718_p0, %p717_p13 }
  0x18   : > { %p720_p5 = pneg %p719_p3 }
  0x1a   : > { %p725_p10 = pnand %p723_p7, %p720_p5 }
  0x1c   : > { %728 = shalt.err (!%p725_p10)
}
  0x1d   : > { %s729_s11 = scalar_lea.vmem %s927_s25, 384  ;;  %p737_p2 = scmp.lt.s32.totalorder %s927_s25, %s927_s25 }
  0x1e   : > { %p730_p11 = scmp.ne.s32.totalorder %s927_s25, %s729_s11  ;;  %p738_p6 = scmp.lt.s32.totalorder %s729_s11, %s729_s11 }
  0x20   : > { %p732_p8 = pnand %p730_p11, %p718_p0  ;;  %p739_p4 = por %p738_p6, %p737_p2 }
  0x22   : > { %p733_p1 = pneg %p732_p8 }
  0x24   : > { %p740_p9 = pnand %p739_p4, %p733_p1 }
  0x26   : > { %743 = shalt.err (!%p740_p9)
}
  0x27   : > { %s847_s12 = smov 128   ;;  %s848_s13 = smov 8  }
  0x28   : > { %660 = dma.hbm_to_vmem [thread:$0]  (!%p934_p12), %s1093_s1, 384, %s927_s25, [#allocation8], %s847_s12, %s847_s12, %s848_s13  }
  0x29   : > { %p27_p2 = scmp.eq.s32.totalorder %s26_s29, 0  ;;  %p36_p1 = scmp.ne.s32.totalorder %s840_s17, %s836_s16 }
  0x2a   : > { %p37_p4 = scmp.eq.s32.totalorder %s844_s18, 0  ;;  %p670_p6 = scmp.lt.s32.totalorder %s844_s18, 2 }
  0x2b   : > { %s970_s24 = scalar_select %p27_p2, %s840_s17, %s29_s28  }
  0x2c   : > { %p38_p8 = por %p37_p4, %p36_p1  ;;  %p1104_p9 = scmp.eq.s32.totalorder %s903_s19, 1 }
  0x2d   : > { %s171_s5 = sand.u32 1, %s840_s17   ;;  %s611_s6 = sshll.u32 %s844_s18, 7 }
  0x2e   : > { %p974_p11 = por %p1104_p9, %p36_p1  ;;  %s610_s7 = sshll.u32 %s171_s5, 3 }
  0x2f   : > { %s983_s9 = scalar_lea.hbm %s1092_s0, %s611_s6  ;;  %s175_s25 = scalar_lea.vmem [#allocation4], %s610_s7 }
  0x30   : > { %s182_s28 = sshll.u32 %s175_s25, 4  ;;  %p985_p12 = pnand %p670_p6, %p38_p8  ;;  %s989_s28 = int_to_ptr.vmem [resolvable:$true] %s182_s28 }
  0x31   : > { %s172_s10 = scalar_lea.sflag [#allocation5], %s171_s5  ;;  %s744_s11 = scalar_lea.hbm %s983_s9, 128 }
  0x32   : > { %p745_p13 = scmp.ne.s32.totalorder %s983_s9, %s744_s11  ;;  %p746_p0 = pneg %p985_p12 }
  0x33   : > { %s749_s14 = scalar_lea.hbm %s1092_s0, 256  ;;  %p750_p7 = scmp.lt.u32.totalorder %s983_s9, %s1092_s0 }
  0x34   : > { %p747_p3 = pnand %p746_p0, %p745_p13  ;;  %p751_p10 = scmp.lt.u32.totalorder %s749_s14, %s744_s11 }
  0x35   : > { %p753_p1 = scmp.lt.u32.totalorder %s744_s11, %s983_s9 }
  0x36   : > { %p748_p5 = pneg %p747_p3  ;;  %p752_p2 = por %p751_p10, %p750_p7 }
  0x38   : > { %p754_p4 = por %p753_p1, %p752_p2 }
  0x3a   : > { %p755_p6 = pnand %p754_p4, %p748_p5 }
  0x3c   : > { %758 = shalt.err (!%p755_p6)
}
  0x3d   : > { %s759_s5 = scalar_lea.vmem %s989_s28, 128  ;;  %s849_s7 = smov [#allocation4]  }
  0x3e   : > { %p760_p8 = scmp.ne.s32.totalorder %s989_s28, %s759_s5  ;;  %s764_s26 = sshll.u32 %s849_s7, 4  ;;  %s765_s26 = int_to_ptr.vmem [resolvable:$false] %s764_s26 }
  0x3f   : > { %s766_s8 = scalar_lea.vmem %s765_s26, 256  ;;  %p767_p3 = scmp.lt.s32.totalorder %s989_s28, %s765_s26 }
  0x40   : > { %p762_p9 = pnand %p760_p8, %p746_p0  ;;  %p768_p7 = scmp.lt.s32.totalorder %s766_s8, %s759_s5 }
  0x42   : > { %p763_p13 = pneg %p762_p9  ;;  %p769_p10 = por %p768_p7, %p767_p3 }
  0x44   : > { %p770_p2 = pnand %p769_p10, %p763_p13 }
  0x46   : > { %773 = shalt.err (!%p770_p2)
}
  0x47   : > { %664 = dma.hbm_to_vmem [thread:$0]  (!%p985_p12), %s983_s9, 128, %s989_s28, %s172_s10  }
  0x48   : > { %p1107_p5 = scmp.ne.s32.totalorder %s1102_s23, 0 }
  0x49   : > { %s1019_s25 = sand.u32 (!%p1107_p5), 1, %s836_s16   ;;  %p1108_p0 = scmp.ne.s32.totalorder (!%p1107_p5), %s1100_s21, 0 }
  0x4a   : > { %191 = sbr.rel (%p1107_p5) target bundleno = 750 (0x2ee), region = 32  ;;  %s613_s11 = sshll.u32 (!%p1107_p5), %s1019_s25, 3 }
  0x4b   : > { %s194_s12 = scalar_lea.sflag (!%p1107_p5), [#allocation5], %s1019_s25  ;;  %s197_s13 = scalar_lea.vmem (!%p1107_p5), [#allocation4], %s613_s11 }
  0x51   : > { %819 = dma.done.wait (%p1108_p0), %s194_s12, 128  }
  0x52   : > { %821 = vsyncadd (%p1108_p0), %s194_s12, 4294967168  ;;  %p1109_p1 = scmp.eq.s32.totalorder %s903_s19, 0 }
  0x54   : > { %823 = dma.done.wait (%p1109_p1), [#allocation8], 384   ;;  %p1110_p12 = pmov %p1109_p1 }
  0x55   : > { %s1031_s23 = scalar_lea.vmem [#allocation9], %s613_s11  ;;  %p1111_p4 = scmp.ne.s32.totalorder %s903_s19, 0 }
  0x56   : > { %825 = vsyncadd (%p1110_p12), [#allocation8], 4294966912  ;;  %vm230_vm0 = vcmask (!%p1111_p4), 7168   ;;  %v850_v0 = vmov (!%p1111_p4), 0.0  }
  0x57   : > { %229 = sbr.rel (%p1111_p4) target bundleno = 94 (0x5e), region = 44  ;;  %231 = vst.msk [vmem:[#allocation2] sm:$0xff] (!%p1111_p4), %vm230_vm0, %v850_v0  ;;  %232 = vst.msk [vmem:[#allocation3] sm:$0xff] (!%p1111_p4), %vm230_vm0, %v850_v0 }
  0x5e PF: > { %v233_v1 = vld [vmem:[%s197_s13] sm:$0xff]  ;;  %v234_v2 = vld [vmem:[#allocation7] sm:$0xff]  ;;  %s851_s21 = smov 127   ;;  %v852_v3 = vmov 0.0   ;;  %vm241_vm1 = vcmask 64512   ;;  %vm853_vm2 = vmmov 0  }
  0x5f   : > { %238 = vrot.lane.b32.xlu0 %v233_v1, %s851_s21  ;;  %636 = vmatprep.subr.mxu0 %v852_v3  ;;  %s854_s9 = smov 126   ;;  %v236_v4 = vld [vmem:[#allocation7 + $0x8] sm:$0xff]  ;;  %v389_v6 = vld [vmem:[#allocation7 + $0x10] sm:$0xff]  ;;  %vm467_vm3 = vcmask 130048   ;;  %v469_v16 = vld [vmem:[#allocation2] sm:$0xff]  ;;  %vm474_vm4 = vcmask 7168  }
  0x60   : > { %637 = vmatpush3.msra.mxu0 %v233_v1  ;;  %638 = vmatprep.mubr.msk.f32.mxu0 %vm853_vm2, %v852_v3  ;;  %v476_v19 = vld [vmem:[#allocation3] sm:$0xff]  ;;  %p620_p6 = scmp.ne.s32.totalorder %s903_s19, 1 }
  0x61   : > { %639 = vmatmul.mubr.msk.f32.vlgmr.msra.gmra.mrb[0].mxu0 %vm241_vm1, %v234_v2  ;;  %631 = vmatprep.subr.mxu1 %v852_v3  ;;  %v493_v29 = vld [vmem:[%s1094_s2] sm:$0xff] (!%p620_p6)  ;;  %s855_s10 = smov (!%p620_p6), 1   ;;  %vm504_vm5 = vcmask (!%p620_p6), 15360  }
  0x62   : > { %641 = vmatprep.subr.mxu0 %v852_v3  ;;  %633 = vmatprep.mubr.msk.f32.mxu1 %vm853_vm2, %v852_v3 }
  0x63   : > { %390 = vrot.lane.b32.xlu0 %v233_v1, %s854_s9  ;;  %643 = vmatprep.mubr.msk.f32.mxu0 %vm853_vm2, %v852_v3 }
  0xd1   : > { %v239_v5 = vpop.permute.xlu0 %238 }
  0xd2   : > { %632 = vmatpush3.msra.mxu1 %v239_v5 }
  0xd3   : > { %634 = vmatmul.mubr.msk.f32.vlgmr.msra.gmra.mrb[0].mxu1 %vm241_vm1, %v236_v4 }
  0xd5   : > { %v391_v7 = vpop.permute.xlu0 %390 }
  0xd6   : > { %642 = vmatpush3.msra.mxu0 %v391_v7 }
  0xd7   : > { %644 = vmatmul.mubr.msk.f32.vlgmr.msra.gmra.mrb[0].mxu0 %vm241_vm1, %v389_v6 }
 0x1a6   : > { %v311_v8 = vpop.f32.mrb[0].mxu1 }
 0x1a7   : > { %v635_v9 = vpop.f32.mrb[1].mxu1 }
 0x1aa   : > { %v462_v10 = vpop.f32.mrb[0].mxu0 }
 0x1ab   : > { %v646_v11 = vadd.f32 %v462_v10, %v311_v8  ;;  %v645_v12 = vpop.f32.mrb[1].mxu0 }
 0x1ad   : > { %v470_v13 = vsel %vm467_vm3, %v646_v11, 0.0  ;;  %468 = vst.msk [vmem:[%s1031_s23] sm:$0xff] %vm467_vm3, %v646_v11  ;;  %v477_v14 = vmul.f32 %v646_v11, %v646_v11 }
 0x1ae   : > { %471 = vadd.xlane.f32.xlu1 %v470_v13 }
 0x1af   : > { %v478_v15 = vsel %vm467_vm3, %v477_v14, 0.0 }
 0x1b2   : > { %479 = vadd.xlane.f32.xlu1 %v478_v15 }
 0x23b   : > { %v472_v17 = vpop.xlane.xlu1 %471 }
 0x23c   : > { %v473_v18 = vadd.f32 %v472_v17, %v469_v16  ;;  %486 = sbr.rel (%p620_p6) target bundleno = 726 (0x2d6), region = 48 }
 0x23e   : > { %475 = vst.msk [vmem:[#allocation2] sm:$0xff] %vm474_vm4, %v473_v18 }
 0x23f   : > { %v480_v20 = vpop.xlane.xlu1 %479 }
 0x240   : > { %v481_v21 = vadd.f32 %v480_v20, %v476_v19 }
 0x242   : > { %482 = vst.msk [vmem:[#allocation3] sm:$0xff] %vm474_vm4, %v481_v21 }
 0x245   : > { %v487_v22 = vld [vmem:[#allocation2] sm:$0xff] }
 0x246   : > { %v488_v24 = vmul.f32 0.03125, %v487_v22 }
 0x248   : > { %v491_v26 = vmul.f32 %v488_v24, %v488_v24 }
 0x249   : > { %v489_v23 = vld [vmem:[#allocation3] sm:$0xff] }
 0x24a   : > { %v490_v25 = vmul.f32 0.03125, %v489_v23 }
 0x24c   : > { %v492_v27 = vsub.f32 %v490_v25, %v491_v26 }
 0x24e   : > { %v494_v28 = vadd.f32 1e-05, %v492_v27 }
 0x250   : > { %714 = vrsqrt.f32 %v494_v28 }
 0x25a   : > { %v715_v30 = vpop.eup %714 }
 0x25b   : > { %v496_v31 = vmul.f32 %v715_v30, %v493_v29 }
 0x25d   : > { %v497_v32 = vmul.f32 %v496_v31, %v488_v24 }
 0x25f   : > { %499 = vrot.lane.b32.xlu0 %v497_v32, %s855_s10 }
 0x2d1   : > { %v500_v33 = vpop.permute.xlu0 %499 }
 0x2d2   : > { %v502_v34 = vsub.f32 %v493_v29, %v500_v33 }
 0x2d4   : > { %v503_v35 = vsel %vm474_vm4, %v496_v31, %v502_v34 }
 0x2d5   : > { %505 = vst.msk [vmem:[%s1096_s4] sm:$0xff] %vm504_vm5, %v503_v35 }
 0x2d6 PF: > { %s622_s6 = sshll.u32 %s903_s19, 7  ;;  %s520_s8 = sshll.u32 %s1031_s23, 4  ;;  %s521_s8 = int_to_ptr.vmem [resolvable:$true] %s520_s8 }
 0x2d7   : > { %s1053_s26 = scalar_lea.hbm %s1095_s3, %s622_s6  ;;  %s507_s11 = scalar_lea.sflag [#allocation6], %s1019_s25 }
 0x2d8   : > { %s774_s12 = scalar_lea.vmem %s521_s8, 128  ;;  %s856_s13 = smov [#allocation9]  }
 0x2d9   : > { %p775_p8 = scmp.ne.s32.totalorder %s521_s8, %s774_s12  ;;  %s778_s21 = sshll.u32 %s856_s13, 4  ;;  %s779_s21 = int_to_ptr.vmem [resolvable:$false] %s778_s21 }
 0x2da   : > { %s780_s9 = scalar_lea.vmem %s779_s21, 256  ;;  %p781_p3 = scmp.lt.s32.totalorder %s521_s8, %s779_s21 }
 0x2db   : > { %p776_p9 = pnand %p775_p8, %p974_p11  ;;  %p782_p7 = scmp.lt.s32.totalorder %s780_s9, %s774_s12 }
 0x2dd   : > { %p777_p13 = pneg %p776_p9  ;;  %p783_p10 = por %p782_p7, %p781_p3 }
 0x2df   : > { %p784_p2 = pnand %p783_p10, %p777_p13 }
 0x2e1   : > { %787 = shalt.err (!%p784_p2)
}
 0x2e2   : > { %s788_s19 = scalar_lea.hbm %s1053_s26, 128  ;;  %s792_s28 = scalar_lea.hbm %s1095_s3, 256 }
 0x2e3   : > { %p789_p5 = scmp.ne.s32.totalorder %s1053_s26, %s788_s19  ;;  %p793_p12 = scmp.lt.u32.totalorder %s1053_s26, %s1095_s3 }
 0x2e4   : > { %p794_p4 = scmp.lt.u32.totalorder %s792_s28, %s788_s19  ;;  %p796_p8 = scmp.lt.u32.totalorder %s788_s19, %s1053_s26 }
 0x2e5   : > { %p790_p0 = pnand %p789_p5, %p974_p11 }
 0x2e6   : > { %p795_p6 = por %p794_p4, %p793_p12 }
 0x2e7   : > { %p791_p1 = pneg %p790_p0 }
 0x2e8   : > { %p797_p9 = por %p796_p8, %p795_p6 }
 0x2ea   : > { %p798_p13 = pnand %p797_p9, %p791_p1 }
 0x2ec   : > { %801 = shalt.err (!%p798_p13)
}
 0x2ed   : > { %655 = dma.vmem_to_hbm [thread:$0]  (%p974_p11), %s521_s8, 128, %s1053_s26, %s507_s11  }
 0x2ee PF: > { %s538_s14 = sand.u32 1, %s832_s15   ;;  %p1112_p3 = scmp.ne.s32.totalorder %s1101_s22, 0 }
 0x2ef   : > { %p1113_p7 = scmp.ge.s32.totalorder %s844_s18, 2  ;;  %s539_s20 = scalar_lea.sflag [#allocation6], %s538_s14 }
 0x2f1   : > { %p666_p10 = pnand %p1113_p7, %p1112_p3 }
 0x2f3   : > { %827 = dma.done.wait (!%p666_p10), %s539_s20, 128  }
 0x2f4   : > { %829 = vsyncadd (!%p666_p10), %s539_s20, 4294967168  ;;  %p19_p2 = scmp.ge.s32.totalorder %s939_s27, 4   ;;  %s1114_s15 = smov %s836_s16 }
 0x2f5   : > { %s1115_s16 = smov %s840_s17  ;;  %s1116_s17 = smov %s970_s24 }
 0x2f6   : > { %s1117_s18 = smov %s939_s27  ;;  %21 = sbr.rel (!%p19_p2) target bundleno = 6 (0x6), region = 99 }
 0x2fd   :  { %544 = vsyncpa [#allocation5], 1 }
 0x2fe   :  { %546 = vsyncpa [#allocation5 + $0x1], 1 }
 0x2ff   :  { %547 = vsyncpa [#allocation8], 1 }
 0x300   :  { %548 = vsyncpa [#allocation6], 1 }
 0x301   :  { %550 = vsyncpa [#allocation6 + $0x1], 1 }

</bundles_post_ra>
